<compile_context>
chip_gen: v7x
topology: tpu7x:2x2x1
jax: 0.10.0
libtpu: 0.0.40
codegen_flags: <defaults>
</compile_context>

<pallas_src>
import jax
import jax.numpy as jnp
from jax.experimental import pallas as pl
from jax.experimental.pallas import tpu as pltpu

EPS = 1e-5
UNIFORM_STDEV = 0.1


def encoder_kernel(
    x_ref,        # (B, D_in)  f32
    bn0_ref,      # (2, D_in)  f32   rows: gamma0, beta0
    w1_ref,       # (D_in, H)  bf16
    bnh_ref,      # (4, H)     f32   rows: gamma1, beta1, gamma2, beta2
    w2_ref,       # (H, H)     bf16
    w3_ref,       # (H, E_pad) bf16  (zero-padded on lanes)
    c3_ref,       # (1, E_pad) f32   (zero-padded on lanes)
    mean_ref,     # (B, E_pad) f32
):
    B = x_ref.shape[0]
    inv_b = 1.0 / float(B)

    def batchnorm(h, gamma, beta):
        # Training-mode BatchNorm1d, one-pass stats: biased variance, eps=1e-5.
        s1 = jnp.sum(h, axis=0, keepdims=True)
        s2 = jnp.sum(h * h, axis=0, keepdims=True)
        mu = s1 * inv_b
        var = s2 * inv_b - mu * mu
        return (h - mu) * jax.lax.rsqrt(var + EPS) * gamma + beta

    x = x_ref[...]

    # BN(D_in) -> Linear(D_in, H)   (c1 cancels under the following BN)
    h = batchnorm(x, bn0_ref[0:1, :], bn0_ref[1:2, :])
    h = jnp.dot(h.astype(jnp.bfloat16), w1_ref[...],
                preferred_element_type=jnp.float32)

    # BN(H) -> ReLU -> Linear(H, H) (c2 cancels under the following BN)
    h = jnp.maximum(batchnorm(h, bnh_ref[0:1, :], bnh_ref[1:2, :]), 0.0)
    h = jnp.dot(h.astype(jnp.bfloat16), w2_ref[...],
                preferred_element_type=jnp.float32)

    # BN(H) -> ReLU -> Linear(H, E)
    h = jnp.maximum(batchnorm(h, bnh_ref[2:3, :], bnh_ref[3:4, :]), 0.0)
    m = jnp.dot(h.astype(jnp.bfloat16), w3_ref[...],
                preferred_element_type=jnp.float32) + c3_ref[...]

    mean_ref[...] = m


def encoder_forward(x_nchw, params):
    """x_nchw: (B, C, H, W). Returns (mean, stdev), each (B, E) float32."""
    B = x_nchw.shape[0]
    x_flat = x_nchw.reshape(B, -1).astype(jnp.float32)       # nn.Flatten()

    hidden = params["w1"].shape[1]
    E = params["w3"].shape[1]
    E_pad = max(128, ((E + 127) // 128) * 128)                # lane-dense output

    # Pack the tiny BN parameters into two operands.
    bn0 = jnp.concatenate([params["g0"], params["b0"]], axis=0)              # (2, D_in)
    bnh = jnp.concatenate([params["g1"], params["b1"],
                           params["g2"], params["b2"]], axis=0)              # (4, H)

    # bf16 matmul operands (f32 accumulate inside the kernel).
    w1 = params["w1"].astype(jnp.bfloat16)
    w2 = params["w2"].astype(jnp.bfloat16)
    w3p = jnp.zeros((hidden, E_pad), jnp.bfloat16).at[:, :E].set(
        params["w3"].astype(jnp.bfloat16))
    c3p = jnp.zeros((1, E_pad), jnp.float32).at[:, :E].set(params["c3"])

    # c1/c2 are intentionally NOT passed: biases preceding a train-mode BN
    # cancel exactly in the forward output.
    operands = (x_flat, bn0, w1, bnh, w2, w3p, c3p)

    vmem_spec = pl.BlockSpec(memory_space=pltpu.MemorySpace.VMEM)
    mean_padded = pl.pallas_call(
        encoder_kernel,
        out_shape=jax.ShapeDtypeStruct((B, E_pad), jnp.float32),
        in_specs=[vmem_spec] * len(operands),
        out_specs=vmem_spec,
    )(*operands)

    mean = mean_padded[:, :E]
    stdev = jnp.full((B, E), UNIFORM_STDEV, jnp.float32)      # constant output
    return mean, stdev


def init_params(key, d_in, hidden, embed):
    """Deterministic init. BN: gamma=1, beta=0. Linear: uniform(+-1/sqrt(fan_in)).

    c1/c2 are created to mirror the PyTorch parameter set, but they are dead
    in the forward pass (cancelled by the subsequent training-mode BN) and are
    therefore not sent to the kernel.
    """
    ks = jax.random.split(key, 6)

    def linear(kw, kb, fan_in, fan_out):
        bound = 1.0 / jnp.sqrt(jnp.float32(fan_in))
        w = jax.random.uniform(kw, (fan_in, fan_out), jnp.float32, -bound, bound)
        b = jax.random.uniform(kb, (1, fan_out), jnp.float32, -bound, bound)
        return w, b

    w1, c1 = linear(ks[0], ks[1], d_in, hidden)
    w2, c2 = linear(ks[2], ks[3], hidden, hidden)
    w3, c3 = linear(ks[4], ks[5], hidden, embed)
    return {
        "g0": jnp.ones((1, d_in), jnp.float32), "b0": jnp.zeros((1, d_in), jnp.float32),
        "w1": w1, "c1": c1,
        "g1": jnp.ones((1, hidden), jnp.float32), "b1": jnp.zeros((1, hidden), jnp.float32),
        "w2": w2, "c2": c2,
        "g2": jnp.ones((1, hidden), jnp.float32), "b2": jnp.zeros((1, hidden), jnp.float32),
        "w3": w3, "c3": c3,
    }


if __name__ == "__main__":
    # Small shapes consistent with the module: data_shape=(1,16,16) -> 256,
    # layer_dimensionality=128, embedding_dimensionality=10, batch=8.
    B, C, H, W = 8, 1, 16, 16
    D_IN, HIDDEN, EMBED = C * H * W, 128, 10

    key = jax.random.PRNGKey(0)
    k_x, k_p = jax.random.split(key)
    x = jax.random.normal(k_x, (B, C, H, W), jnp.float32)
    params = init_params(k_p, D_IN, HIDDEN, EMBED)

    mean, stdev = encoder_forward(x, params)
    jax.block_until_ready((mean, stdev))

    assert mean.shape == (B, EMBED) and stdev.shape == (B, EMBED)
    assert bool(jnp.all(jnp.abs(stdev - UNIFORM_STDEV) < 1e-7))
    assert bool(jnp.all(jnp.isfinite(mean)))
    print("KERNEL_OK")
</pallas_src>

<mosaic_0001>
module attributes {stable_mosaic.version = 11 : i64} {
  func.func @encoder_kernel(%arg0: memref<8x256xf32, #tpu.memory_space<vmem>>, %arg1: memref<2x256xf32, #tpu.memory_space<vmem>>, %arg2: memref<256x128xbf16, #tpu.memory_space<vmem>>, %arg3: memref<4x128xf32, #tpu.memory_space<vmem>>, %arg4: memref<128x128xbf16, #tpu.memory_space<vmem>>, %arg5: memref<128x128xbf16, #tpu.memory_space<vmem>>, %arg6: memref<1x128xf32, #tpu.memory_space<vmem>>, %arg7: memref<8x128xf32, #tpu.memory_space<vmem>>) attributes {dimension_semantics = [], scalar_prefetch = 0 : i64, scratch_operands = 0 : i64, tpu.core_type = #tpu.core_type<tc>} {
    %c0 = arith.constant 0 : index
    %c0_0 = arith.constant 0 : index
    %0 = vector.load %arg0[%c0, %c0_0] : memref<8x256xf32, #tpu.memory_space<vmem>>, vector<8x256xf32>
    %c0_1 = arith.constant 0 : index
    %c0_2 = arith.constant 0 : index
    %1 = vector.load %arg1[%c0_1, %c0_2] : memref<2x256xf32, #tpu.memory_space<vmem>>, vector<1x256xf32>
    %c1 = arith.constant 1 : index
    %c0_3 = arith.constant 0 : index
    %2 = vector.load %arg1[%c1, %c0_3] : memref<2x256xf32, #tpu.memory_space<vmem>>, vector<1x256xf32>
    %cst = arith.constant dense<0.000000e+00> : vector<256xf32>
    %3 = vector.multi_reduction <add>, %0, %cst [0] : vector<8x256xf32> to vector<256xf32>
    %4 = vector.shape_cast %3 : vector<256xf32> to vector<1x256xf32>
    %5 = arith.mulf %0, %0 : vector<8x256xf32>
    %cst_4 = arith.constant dense<0.000000e+00> : vector<256xf32>
    %6 = vector.multi_reduction <add>, %5, %cst_4 [0] : vector<8x256xf32> to vector<256xf32>
    %7 = vector.shape_cast %6 : vector<256xf32> to vector<1x256xf32>
    %cst_5 = arith.constant 1.250000e-01 : f32
    %8 = vector.broadcast %cst_5 : f32 to vector<1x256xf32>
    %9 = arith.mulf %4, %8 : vector<1x256xf32>
    %cst_6 = arith.constant 1.250000e-01 : f32
    %10 = vector.broadcast %cst_6 : f32 to vector<1x256xf32>
    %11 = arith.mulf %7, %10 : vector<1x256xf32>
    %12 = arith.mulf %9, %9 : vector<1x256xf32>
    %13 = arith.subf %11, %12 : vector<1x256xf32>
    %14 = vector.broadcast %9 : vector<1x256xf32> to vector<8x256xf32>
    %15 = arith.subf %0, %14 : vector<8x256xf32>
    %cst_7 = arith.constant 9.99999974E-6 : f32
    %16 = vector.broadcast %cst_7 : f32 to vector<1x256xf32>
    %17 = arith.addf %13, %16 : vector<1x256xf32>
    %18 = math.rsqrt %17 : vector<1x256xf32>
    %19 = vector.broadcast %18 : vector<1x256xf32> to vector<8x256xf32>
    %20 = arith.mulf %15, %19 : vector<8x256xf32>
    %21 = vector.broadcast %1 : vector<1x256xf32> to vector<8x256xf32>
    %22 = arith.mulf %20, %21 : vector<8x256xf32>
    %23 = vector.broadcast %2 : vector<1x256xf32> to vector<8x256xf32>
    %24 = arith.addf %22, %23 : vector<8x256xf32>
    %25 = arith.truncf %24 : vector<8x256xf32> to vector<8x256xbf16>
    %c0_8 = arith.constant 0 : index
    %c0_9 = arith.constant 0 : index
    %26 = vector.load %arg2[%c0_8, %c0_9] : memref<256x128xbf16, #tpu.memory_space<vmem>>, vector<256x128xbf16>
    %cst_10 = arith.constant dense<0.000000e+00> : vector<8x128xf32>
    %27 = tpu.matmul %25, %26, %cst_10 {dimension_numbers = #tpu.dot_dimension_numbers<[1], [0], [0], [1], [0, 0, 1, 1], [], []>} : vector<8x256xbf16>, vector<256x128xbf16>, vector<8x128xf32> -> vector<8x128xf32>
    %c0_11 = arith.constant 0 : index
    %c0_12 = arith.constant 0 : index
    %28 = vector.load %arg3[%c0_11, %c0_12] : memref<4x128xf32, #tpu.memory_space<vmem>>, vector<1x128xf32>
    %c1_13 = arith.constant 1 : index
    %c0_14 = arith.constant 0 : index
    %29 = vector.load %arg3[%c1_13, %c0_14] : memref<4x128xf32, #tpu.memory_space<vmem>>, vector<1x128xf32>
    %cst_15 = arith.constant dense<0.000000e+00> : vector<128xf32>
    %30 = vector.multi_reduction <add>, %27, %cst_15 [0] : vector<8x128xf32> to vector<128xf32>
    %31 = vector.shape_cast %30 : vector<128xf32> to vector<1x128xf32>
    %32 = arith.mulf %27, %27 : vector<8x128xf32>
    %cst_16 = arith.constant dense<0.000000e+00> : vector<128xf32>
    %33 = vector.multi_reduction <add>, %32, %cst_16 [0] : vector<8x128xf32> to vector<128xf32>
    %34 = vector.shape_cast %33 : vector<128xf32> to vector<1x128xf32>
    %cst_17 = arith.constant 1.250000e-01 : f32
    %35 = vector.broadcast %cst_17 : f32 to vector<1x128xf32>
    %36 = arith.mulf %31, %35 : vector<1x128xf32>
    %cst_18 = arith.constant 1.250000e-01 : f32
    %37 = vector.broadcast %cst_18 : f32 to vector<1x128xf32>
    %38 = arith.mulf %34, %37 : vector<1x128xf32>
    %39 = arith.mulf %36, %36 : vector<1x128xf32>
    %40 = arith.subf %38, %39 : vector<1x128xf32>
    %41 = vector.broadcast %36 : vector<1x128xf32> to vector<8x128xf32>
    %42 = arith.subf %27, %41 : vector<8x128xf32>
    %cst_19 = arith.constant 9.99999974E-6 : f32
    %43 = vector.broadcast %cst_19 : f32 to vector<1x128xf32>
    %44 = arith.addf %40, %43 : vector<1x128xf32>
    %45 = math.rsqrt %44 : vector<1x128xf32>
    %46 = vector.broadcast %45 : vector<1x128xf32> to vector<8x128xf32>
    %47 = arith.mulf %42, %46 : vector<8x128xf32>
    %48 = vector.broadcast %28 : vector<1x128xf32> to vector<8x128xf32>
    %49 = arith.mulf %47, %48 : vector<8x128xf32>
    %50 = vector.broadcast %29 : vector<1x128xf32> to vector<8x128xf32>
    %51 = arith.addf %49, %50 : vector<8x128xf32>
    %cst_20 = arith.constant 0.000000e+00 : f32
    %52 = vector.broadcast %cst_20 : f32 to vector<8x128xf32>
    %53 = arith.maximumf %51, %52 : vector<8x128xf32>
    %54 = arith.truncf %53 : vector<8x128xf32> to vector<8x128xbf16>
    %c0_21 = arith.constant 0 : index
    %c0_22 = arith.constant 0 : index
    %55 = vector.load %arg4[%c0_21, %c0_22] : memref<128x128xbf16, #tpu.memory_space<vmem>>, vector<128x128xbf16>
    %cst_23 = arith.constant dense<0.000000e+00> : vector<8x128xf32>
    %56 = tpu.matmul %54, %55, %cst_23 {dimension_numbers = #tpu.dot_dimension_numbers<[1], [0], [0], [1], [0, 0, 1, 1], [], []>} : vector<8x128xbf16>, vector<128x128xbf16>, vector<8x128xf32> -> vector<8x128xf32>
    %c2 = arith.constant 2 : index
    %c0_24 = arith.constant 0 : index
    %57 = vector.load %arg3[%c2, %c0_24] : memref<4x128xf32, #tpu.memory_space<vmem>>, vector<1x128xf32>
    %c3 = arith.constant 3 : index
    %c0_25 = arith.constant 0 : index
    %58 = vector.load %arg3[%c3, %c0_25] : memref<4x128xf32, #tpu.memory_space<vmem>>, vector<1x128xf32>
    %cst_26 = arith.constant dense<0.000000e+00> : vector<128xf32>
    %59 = vector.multi_reduction <add>, %56, %cst_26 [0] : vector<8x128xf32> to vector<128xf32>
    %60 = vector.shape_cast %59 : vector<128xf32> to vector<1x128xf32>
    %61 = arith.mulf %56, %56 : vector<8x128xf32>
    %cst_27 = arith.constant dense<0.000000e+00> : vector<128xf32>
    %62 = vector.multi_reduction <add>, %61, %cst_27 [0] : vector<8x128xf32> to vector<128xf32>
    %63 = vector.shape_cast %62 : vector<128xf32> to vector<1x128xf32>
    %cst_28 = arith.constant 1.250000e-01 : f32
    %64 = vector.broadcast %cst_28 : f32 to vector<1x128xf32>
    %65 = arith.mulf %60, %64 : vector<1x128xf32>
    %cst_29 = arith.constant 1.250000e-01 : f32
    %66 = vector.broadcast %cst_29 : f32 to vector<1x128xf32>
    %67 = arith.mulf %63, %66 : vector<1x128xf32>
    %68 = arith.mulf %65, %65 : vector<1x128xf32>
    %69 = arith.subf %67, %68 : vector<1x128xf32>
    %70 = vector.broadcast %65 : vector<1x128xf32> to vector<8x128xf32>
    %71 = arith.subf %56, %70 : vector<8x128xf32>
    %cst_30 = arith.constant 9.99999974E-6 : f32
    %72 = vector.broadcast %cst_30 : f32 to vector<1x128xf32>
    %73 = arith.addf %69, %72 : vector<1x128xf32>
    %74 = math.rsqrt %73 : vector<1x128xf32>
    %75 = vector.broadcast %74 : vector<1x128xf32> to vector<8x128xf32>
    %76 = arith.mulf %71, %75 : vector<8x128xf32>
    %77 = vector.broadcast %57 : vector<1x128xf32> to vector<8x128xf32>
    %78 = arith.mulf %76, %77 : vector<8x128xf32>
    %79 = vector.broadcast %58 : vector<1x128xf32> to vector<8x128xf32>
    %80 = arith.addf %78, %79 : vector<8x128xf32>
    %cst_31 = arith.constant 0.000000e+00 : f32
    %81 = vector.broadcast %cst_31 : f32 to vector<8x128xf32>
    %82 = arith.maximumf %80, %81 : vector<8x128xf32>
    %83 = arith.truncf %82 : vector<8x128xf32> to vector<8x128xbf16>
    %c0_32 = arith.constant 0 : index
    %c0_33 = arith.constant 0 : index
    %84 = vector.load %arg5[%c0_32, %c0_33] : memref<128x128xbf16, #tpu.memory_space<vmem>>, vector<128x128xbf16>
    %cst_34 = arith.constant dense<0.000000e+00> : vector<8x128xf32>
    %85 = tpu.matmul %83, %84, %cst_34 {dimension_numbers = #tpu.dot_dimension_numbers<[1], [0], [0], [1], [0, 0, 1, 1], [], []>} : vector<8x128xbf16>, vector<128x128xbf16>, vector<8x128xf32> -> vector<8x128xf32>
    %c0_35 = arith.constant 0 : index
    %c0_36 = arith.constant 0 : index
    %86 = vector.load %arg6[%c0_35, %c0_36] : memref<1x128xf32, #tpu.memory_space<vmem>>, vector<1x128xf32>
    %87 = vector.broadcast %86 : vector<1x128xf32> to vector<8x128xf32>
    %88 = arith.addf %85, %87 : vector<8x128xf32>
    %c0_37 = arith.constant 0 : index
    %c0_38 = arith.constant 0 : index
    %89 = vector.load %arg7[%c0_37, %c0_38] : memref<8x128xf32, #tpu.memory_space<vmem>>, vector<8x128xf32>
    tpu.vector_store %arg7[%c0_37, %c0_38], %88 {strides = array<i32>} : memref<8x128xf32, #tpu.memory_space<vmem>>, vector<8x128xf32>,
    return
  }
}

</mosaic_0001>

<bundles_post_ra>
// kernel: tpu_custom_call.1
= control target key start
LH: loop header
LB: loop body
LE: loop exit
PB: predicated region body
PF: predicated region fallthrough
CT: control target
= control target key end

     0   :  { %12 = vsyncpa [#allocation3], 0  ;;  %s1123_s0 = inlined_call_operand.hbm [shape: f32[8,256], index: 0, kind: input, shape index: {}]   ;;  %s1124_s1 = inlined_call_operand.hbm [shape: f32[2,256], index: 1, kind: input, shape index: {}]   ;;  %s1125_s2 = inlined_call_operand.hbm [shape: bf16[256,128], index: 2, kind: input, shape index: {}]   ;;  %s1126_s3 = inlined_call_operand.vmem [shape: f32[4,128], index: 3, kind: input, shape index: {}]   ;;  %s1127_s4 = inlined_call_operand.hbm [shape: bf16[128,128], index: 4, kind: input, shape index: {}]   ;;  %s1128_s5 = inlined_call_operand.hbm [shape: bf16[128,128], index: 5, kind: input, shape index: {}]   ;;  %s1129_s6 = inlined_call_operand.vmem [shape: f32[1,128], index: 6, kind: input, shape index: {}]   ;;  %s1130_s7 = inlined_call_operand.hbm [shape: f32[8,128], index: 7, kind: output, shape index: {}]  }
   0x1   :  { %13 = vsyncpa [#allocation6], 0 }
   0x2   :  { %14 = vsyncpa [#allocation9], 0 }
   0x3   :  { %15 = vsyncpa [#allocation4], 0  ;;  %s945_s24 = smov [#allocation5]   ;;  %s805_s28 = scalar_lea.hbm %s1124_s1, 64 }
   0x4   :  { %s32_s25 = sshll.u32 %s945_s24, 4  ;;  %p806_p0 = scmp.ne.s32.totalorder %s1124_s1, %s805_s28  ;;  %s33_s25 = int_to_ptr.vmem [resolvable:$true] %s32_s25 }
   0x5   :  { %p809_p1 = scmp.lt.u32.totalorder %s805_s28, %s1124_s1 }
   0x7   :  { %p811_p2 = pnand %p809_p1, %p806_p0 }
   0x9   :  { %814 = shalt.err (!%p811_p2)
}
   0xa   :  { %s815_s10 = scalar_lea.vmem %s33_s25, 64  ;;  %p820_p4 = scmp.lt.s32.totalorder %s33_s25, %s33_s25 }
   0xb   :  { %p816_p3 = scmp.ne.s32.totalorder %s33_s25, %s815_s10  ;;  %p821_p5 = scmp.lt.s32.totalorder %s815_s10, %s815_s10 }
   0xd   :  { %p822_p6 = por %p821_p5, %p820_p4 }
   0xf   :  { %p823_p7 = pnand %p822_p6, %p816_p3 }
  0x11   :  { %826 = shalt.err (!%p823_p7)
}
  0x12   :  { %35 = dma.hbm_to_vmem [thread:$0]  %s1124_s1, 64, %s33_s25, [#allocation6]  }
  0x13   :  { %s946_s13 = smov [#allocation8]   ;;  %s947_s15 = smov [#allocation2]  }
  0x14   :  { %s55_s14 = sshll.u32 %s946_s13, 4  ;;  %s22_s16 = sshll.u32 %s947_s15, 4  ;;  %s56_s14 = int_to_ptr.vmem [resolvable:$true] %s55_s14  ;;  %s23_s16 = int_to_ptr.vmem [resolvable:$true] %s22_s16 }
  0x15   :  { %s827_s19 = scalar_lea.hbm %s1127_s4, 1024 }
  0x16   :  { %p828_p8 = scmp.ne.s32.totalorder %s1127_s4, %s827_s19  ;;  %p831_p9 = scmp.lt.u32.totalorder %s827_s19, %s1127_s4 }
  0x18   :  { %p833_p10 = pnand %p831_p9, %p828_p8 }
  0x1a   :  { %836 = shalt.err (!%p833_p10)
}
  0x1b   :  { %s837_s1 = scalar_lea.vmem %s56_s14, 1024  ;;  %p842_p12 = scmp.lt.s32.totalorder %s56_s14, %s56_s14 }
  0x1c   :  { %p838_p11 = scmp.ne.s32.totalorder %s56_s14, %s837_s1  ;;  %p843_p13 = scmp.lt.s32.totalorder %s837_s1, %s837_s1 }
  0x1e   :  { %p844_p0 = por %p843_p13, %p842_p12 }
  0x20   :  { %p845_p1 = pnand %p844_p0, %p838_p11 }
  0x22   :  { %848 = shalt.err (!%p845_p1)
}
  0x23   :  { %s948_s24 = smov 64   ;;  %s949_s25 = smov 4  }
  0x24   :  { %61 = dma.hbm_to_vmem [thread:$0]  %s1127_s4, 1024, %s56_s14, [#allocation9], %s948_s24, %s948_s24, %s949_s25  }
  0x25   :  { %s849_s30 = scalar_lea.hbm %s1123_s0, 256 }
  0x26   :  { %p850_p2 = scmp.ne.s32.totalorder %s1123_s0, %s849_s30  ;;  %p853_p3 = scmp.lt.u32.totalorder %s849_s30, %s1123_s0 }
  0x28   :  { %p855_p4 = pnand %p853_p3, %p850_p2 }
  0x2a   :  { %858 = shalt.err (!%p855_p4)
}
  0x2b   :  { %s859_s12 = scalar_lea.vmem %s23_s16, 256  ;;  %p864_p6 = scmp.lt.s32.totalorder %s23_s16, %s23_s16 }
  0x2c   :  { %p860_p5 = scmp.ne.s32.totalorder %s23_s16, %s859_s12  ;;  %p865_p7 = scmp.lt.s32.totalorder %s859_s12, %s859_s12 }
  0x2e   :  { %p866_p8 = por %p865_p7, %p864_p6 }
  0x30   :  { %p867_p9 = pnand %p866_p8, %p860_p5 }
  0x32   :  { %870 = shalt.err (!%p867_p9)
}
  0x33   :  { %25 = dma.hbm_to_vmem [thread:$0]  %s1123_s0, 256, %s23_s16, [#allocation3]  }
  0x34   :  { %s950_s14 = smov [#allocation7]   ;;  %s951_s17 = smov [#allocation10]  }
  0x35   :  { %s41_s15 = sshll.u32 %s950_s14, 4  ;;  %s67_s18 = sshll.u32 %s951_s17, 4  ;;  %s42_s15 = int_to_ptr.vmem [resolvable:$true] %s41_s15  ;;  %s68_s18 = int_to_ptr.vmem [resolvable:$true] %s67_s18 }
  0x36   :  { %s871_s21 = scalar_lea.hbm %s1125_s2, 2048 }
  0x37   :  { %p872_p10 = scmp.ne.s32.totalorder %s1125_s2, %s871_s21  ;;  %p875_p11 = scmp.lt.u32.totalorder %s871_s21, %s1125_s2 }
  0x39   :  { %p877_p12 = pnand %p875_p11, %p872_p10 }
  0x3b   :  { %880 = shalt.err (!%p877_p12)
}
  0x3c   :  { %s881_s0 = scalar_lea.vmem %s42_s15, 2048  ;;  %p886_p0 = scmp.lt.s32.totalorder %s42_s15, %s42_s15 }
  0x3d   :  { %p882_p13 = scmp.ne.s32.totalorder %s42_s15, %s881_s0  ;;  %p887_p1 = scmp.lt.s32.totalorder %s881_s0, %s881_s0 }
  0x3f   :  { %p888_p2 = por %p887_p1, %p886_p0 }
  0x41   :  { %p889_p3 = pnand %p888_p2, %p882_p13 }
  0x43   :  { %892 = shalt.err (!%p889_p3)
}
  0x44   :  { %47 = dma.hbm_to_vmem [thread:$0]  %s1125_s2, 2048, %s42_s15, [#allocation6], %s948_s24, %s948_s24, %s949_s25  }
  0x45   :  { %s893_s30 = scalar_lea.hbm %s1128_s5, 1024 }
  0x46   :  { %p894_p4 = scmp.ne.s32.totalorder %s1128_s5, %s893_s30  ;;  %p897_p5 = scmp.lt.u32.totalorder %s893_s30, %s1128_s5 }
  0x48   :  { %p899_p6 = pnand %p897_p5, %p894_p4 }
  0x4a   :  { %902 = shalt.err (!%p899_p6)
}
  0x4b   :  { %s903_s12 = scalar_lea.vmem %s68_s18, 1024  ;;  %p908_p8 = scmp.lt.s32.totalorder %s68_s18, %s68_s18 }
  0x4c   :  { %p904_p7 = scmp.ne.s32.totalorder %s68_s18, %s903_s12  ;;  %p909_p9 = scmp.lt.s32.totalorder %s903_s12, %s903_s12 }
  0x4e   :  { %p910_p10 = por %p909_p9, %p908_p8 }
  0x50   :  { %p911_p11 = pnand %p910_p10, %p904_p7 }
  0x52   :  { %914 = shalt.err (!%p911_p11)
}
  0x53   :  { %73 = dma.hbm_to_vmem [thread:$0]  %s1128_s5, 1024, %s68_s18, [#allocation9], %s948_s24, %s948_s24, %s949_s25  }
  0x54   :  { %937 = dma.done.wait [#allocation3], 256  }
  0x55   :  { %938 = vsyncadd [#allocation3], 4294967040 }
  0x56   :  { %939 = dma.done.wait [#allocation6], 2112  }
  0x57   :  { %940 = vsyncadd [#allocation6], 4294965184 }
  0x58   :  { %941 = dma.done.wait [#allocation9], 2048  }
  0x59   :  { %942 = vsyncadd [#allocation9], 4294965248  ;;  %v765_v0 = vld [vmem:[#allocation7 + $0x40] sm:$0xff]   ;;  %v767_v2 = vld [vmem:[#allocation7 + $0x48] sm:$0xff]   ;;  %v140_v51 = vlaneseq  ;;  %vm953_vm0 = vmmov 0   ;;  %s954_s21 = smov [#allocation11]  }
  0x5a   :  { %v766_v1 = vld [vmem:[#allocation7] sm:$0xff]   ;;  %675 = vmatprep.subr.bf16.mxu0 %v765_v0  ;;  %v768_v3 = vld [vmem:[#allocation7 + $0x8] sm:$0xff]   ;;  %v769_v4 = vld [vmem:[#allocation7 + $0x50] sm:$0xff]   ;;  %s627_s22 = sshll.u32 %s954_s21, 4  ;;  %s628_s22 = int_to_ptr.vmem [resolvable:$true] %s627_s22 }
  0x5b   :  { %676 = vmatpush3.bf16.msra.mxu0 %v766_v1  ;;  %v770_v5 = vld [vmem:[#allocation7 + $0x10] sm:$0xff]   ;;  %v771_v6 = vld [vmem:[#allocation7 + $0x58] sm:$0xff]   ;;  %v773_v8 = vld [vmem:[#allocation7 + $0x60] sm:$0xff]   ;;  %v141_v55 = vshrl.u32 %v140_v51, 7  ;;  %s915_s23 = scalar_lea.vmem %s628_s22, 128  ;;  %p920_p13 = scmp.lt.s32.totalorder %s628_s22, %s628_s22 }
  0x5c   :  { %677 = vmatprep.subr.bf16.mxu0 %v767_v2  ;;  %v772_v7 = vld [vmem:[#allocation7 + $0x18] sm:$0xff]   ;;  %v774_v9 = vld [vmem:[#allocation7 + $0x20] sm:$0xff]   ;;  %v775_v10 = vld [vmem:[#allocation7 + $0x68] sm:$0xff]   ;;  %p916_p12 = scmp.ne.s32.totalorder %s628_s22, %s915_s23  ;;  %p921_p0 = scmp.lt.s32.totalorder %s915_s23, %s915_s23 }
  0x5d   :  { %v1064_v11 = vld [vmem:[#allocation2 + $0x8] sm:$0xff]  ;;  %v1066_v12 = vld [vmem:[#allocation2] sm:$0xff]  ;;  %v146_v56 = vsub.s32 1, %v141_v55  ;;  %v94_v57 = vld [vmem:[#allocation5] ss:$2 sm:$0x3] }
  0x5e   :  { %v103_v13 = vrot.slane %v1064_v11, 4  ;;  %v110_v14 = vmul.f32 %v1064_v11, %v1064_v11  ;;  %v97_v15 = vrot.slane %v1066_v12, 4  ;;  %v109_v16 = vmul.f32 %v1066_v12, %v1066_v12  ;;  %v776_v17 = vld [vmem:[#allocation7 + $0x28] sm:$0xff]   ;;  %v777_v20 = vld [vmem:[#allocation7 + $0x70] sm:$0xff]   ;;  %v779_v30 = vld [vmem:[#allocation7 + $0x78] sm:$0xff]   ;;  %p922_p1 = por %p921_p0, %p920_p13 }
  0x5f   :  { %678 = vmatpush3.bf16.msra.mxu0 %v768_v3  ;;  %v778_v27 = vld [vmem:[#allocation7 + $0x30] sm:$0xff]   ;;  %v780_v37 = vld [vmem:[#allocation7 + $0x38] sm:$0xff]   ;;  %v142_v58 = vsub.s32 0, %v141_v55  ;;  %v147_v62 = vrot.slane %v94_v57, %v146_v56 }
  0x60   :  { %679 = vmatprep.subr.bf16.mxu0 %v769_v4  ;;  %v104_v18 = vadd.f32 %v103_v13, %v1064_v11  ;;  %v117_v19 = vrot.slane %v110_v14, 4  ;;  %v98_v21 = vadd.f32 %v97_v15, %v1066_v12  ;;  %v111_v22 = vrot.slane %v109_v16, 4  ;;  %v96_v60 = vld [vmem:[#allocation5 + $0x1] ss:$2 sm:$0x3]  ;;  %v783_v15 = vld [vmem:[#allocation8 + $0x10] sm:$0xff]   ;;  %p923_p2 = pnand %p922_p1, %p916_p12 }
  0x61   :  { %v143_v0 = vrot.slane %v94_v57, %v142_v58  ;;  %v160_v3 = vrot.slane %v96_v60, %v146_v56  ;;  %v156_v4 = vrot.slane %v96_v60, %v142_v58  ;;  %v791_v55 = vld [vmem:[#allocation10 + $0x10] sm:$0xff]   ;;  %v792_v56 = vld [vmem:[#allocation10 + $0x18] sm:$0xff]   ;;  %v793_v57 = vld [vmem:[#allocation10 + $0x20] sm:$0xff]  }
  0x62   :  { %v105_v23 = vrot.slane %v104_v18, 2  ;;  %v118_v24 = vadd.f32 %v117_v19, %v110_v14  ;;  %v99_v25 = vrot.slane %v98_v21, 2  ;;  %v112_v26 = vadd.f32 %v111_v22, %v109_v16  ;;  %v784_v16 = vld [vmem:[#allocation8 + $0x18] sm:$0xff]   ;;  %v787_v19 = vld [vmem:[#allocation8 + $0x30] sm:$0xff]   ;;  %v794_v58 = vld [vmem:[#allocation10 + $0x28] sm:$0xff]  }
  0x63   :  { %680 = vmatpush3.bf16.msra.mxu0 %v770_v5  ;;  %v952_v14 = vmov 0.0   ;;  %v796_v60 = vld [vmem:[#allocation10 + $0x38] sm:$0xff]  }
  0x64   :  { %681 = vmatprep.subr.bf16.mxu0 %v771_v6  ;;  %v106_v28 = vadd.f32 %v105_v23, %v104_v18  ;;  %v119_v29 = vrot.slane %v118_v24, 2  ;;  %v100_v31 = vadd.f32 %v99_v25, %v98_v21  ;;  %v113_v32 = vrot.slane %v112_v26, 2  ;;  %715 = vmatprep.subr.bf16.mxu1 %v952_v14  ;;  %v786_v18 = vld [vmem:[#allocation8 + $0x28] sm:$0xff]  }
  0x65   :  { %731 = vmatprep.mubr.msk.bf16.mxu1 %vm953_vm0, %v952_v14 }
  0x66   :  { %v107_v33 = vrot.slane %v106_v28, 1  ;;  %v120_v34 = vadd.f32 %v119_v29, %v118_v24  ;;  %v101_v35 = vrot.slane %v100_v31, 1  ;;  %v114_v36 = vadd.f32 %v113_v32, %v112_v26 }
  0x67   :  { %682 = vmatpush3.bf16.msra.mxu0 %v772_v7 }
  0x68   :  { %683 = vmatprep.subr.bf16.mxu0 %v773_v8  ;;  %v108_v38 = vadd.f32 %v107_v33, %v106_v28  ;;  %v121_v39 = vrot.slane %v120_v34, 1  ;;  %v102_v40 = vadd.f32 %v101_v35, %v100_v31  ;;  %v115_v41 = vrot.slane %v114_v36, 1 }
  0x6a   :  { %v122_v42 = vadd.f32 %v121_v39, %v120_v34  ;;  %v124_v43 = vmul.f32 0.125, %v108_v38  ;;  %v116_v44 = vadd.f32 %v115_v41, %v114_v36  ;;  %v123_v45 = vmul.f32 0.125, %v102_v40 }
  0x6b   :  { %684 = vmatpush3.bf16.msra.mxu0 %v774_v9 }
  0x6c   :  { %685 = vmatprep.subr.bf16.mxu0 %v775_v10  ;;  %v126_v46 = vmul.f32 0.125, %v122_v42  ;;  %v128_v47 = vmul.f32 %v124_v43, %v124_v43  ;;  %v125_v48 = vmul.f32 0.125, %v116_v44  ;;  %v127_v49 = vmul.f32 %v123_v45, %v123_v45 }
  0x6d   :  { %v132_v59 = vsub.f32 %v1064_v11, %v124_v43  ;;  %v131_v61 = vsub.f32 %v1066_v12, %v123_v45  ;;  %v781_v11 = vld [vmem:[#allocation8] sm:$0xff]   ;;  %v782_v12 = vld [vmem:[#allocation8 + $0x8] sm:$0xff]  }
  0x6e   :  { %v130_v50 = vsub.f32 %v126_v46, %v128_v47  ;;  %v129_v52 = vsub.f32 %v125_v48, %v127_v49  ;;  %716 = vmatpush3.bf16.msra.mxu1 %v781_v11  ;;  %v654_v46 = vld [vmem:[%s1126_s3] ss:$0 sm:$0xff]  ;;  %v655_v48 = vld [vmem:[%s1126_s3 + $0x1] ss:$0 sm:$0xff] }
  0x6f   :  { %686 = vmatpush3.bf16.msra.mxu0 %v776_v17  ;;  %717 = vmatprep.subr.bf16.mxu1 %v952_v14  ;;  %v785_v17 = vld [vmem:[#allocation8 + $0x20] sm:$0xff]  }
  0x70   :  { %687 = vmatprep.subr.bf16.mxu0 %v777_v20  ;;  %v134_v53 = vadd.f32 1e-05, %v130_v50  ;;  %v133_v54 = vadd.f32 1e-05, %v129_v52  ;;  %v788_v20 = vld [vmem:[#allocation8 + $0x38] sm:$0xff]  }
  0x72   :  { %797 = vrsqrt.f32 %v134_v53  ;;  %718 = vmatpush3.bf16.msra.mxu1 %v782_v12  ;;  %v789_v53 = vld [vmem:[#allocation10] sm:$0xff]  }
  0x73   :  { %688 = vmatpush3.bf16.msra.mxu0 %v778_v27  ;;  %799 = vrsqrt.f32 %v133_v54  ;;  %719 = vmatprep.subr.bf16.mxu1 %v952_v14  ;;  %v790_v54 = vld [vmem:[#allocation10 + $0x8] sm:$0xff]  }
  0x74   :  { %689 = vmatprep.subr.bf16.mxu0 %v779_v30 }
  0x76   :  { %720 = vmatpush3.bf16.msra.mxu1 %v783_v15 }
  0x77   :  { %690 = vmatpush3.bf16.msra.mxu0 %v780_v37  ;;  %721 = vmatprep.subr.bf16.mxu1 %v952_v14 }
  0x78   :  { %735 = vmatprep.subr.bf16.mxu0 %v952_v14 }
  0x7a   :  { %722 = vmatpush3.bf16.msra.mxu1 %v784_v16 }
  0x7b   :  { %723 = vmatprep.subr.bf16.mxu1 %v952_v14 }
  0x7c   :  { %v798_v63 = vpop.eup %797 }
  0x7d   :  { %v800_v1 = vpop.eup %799  ;;  %v138_v2 = vmul.f32 %v798_v63, %v132_v59  ;;  %v795_v59 = vld [vmem:[#allocation10 + $0x30] sm:$0xff]  }
  0x7e   :  { %v137_v5 = vmul.f32 %v800_v1, %v131_v61  ;;  %724 = vmatpush3.bf16.msra.mxu1 %v785_v17 }
  0x7f   :  { %v151_v6 = vmul.f32 %v147_v62, %v138_v2  ;;  %725 = vmatprep.subr.bf16.mxu1 %v952_v14 }
  0x80   :  { %v150_v7 = vmul.f32 %v143_v0, %v137_v5 }
  0x81   :  { %v164_v8 = vadd.f32 %v160_v3, %v151_v6 }
  0x82   :  { %v163_v9 = vadd.f32 %v156_v4, %v150_v7  ;;  %726 = vmatpush3.bf16.msra.mxu1 %v786_v18 }
  0x83   :  { %v166_v10 = vpack.c.bf16 %v164_v8, %v164_v8  ;;  %727 = vmatprep.subr.bf16.mxu1 %v952_v14 }
  0x84   :  { %v165_v13 = vpack.c.bf16 %v163_v9, %v163_v9 }
  0x85   :  { %327 = vmatprep.mubr.bf16.mxu0 %v166_v10 }
  0x86   :  { %328 = vmatmul.mubr.bf16.vlgmr.msra.gmra.mrb[0].mxu0 %v165_v13  ;;  %728 = vmatpush3.bf16.msra.mxu1 %v787_v19 }
  0x87   :  { %751 = vmatprep.mubr.msk.bf16.mxu0 %vm953_vm0, %v952_v14  ;;  %729 = vmatprep.subr.bf16.mxu1 %v952_v14 }
  0x88   :  { %736 = vmatpush3.bf16.msra.mxu0 %v789_v53 }
  0x89   :  { %737 = vmatprep.subr.bf16.mxu0 %v952_v14 }
  0x8a   :  { %730 = vmatpush3.bf16.msra.mxu1 %v788_v20 }
  0x8c   :  { %738 = vmatpush3.bf16.msra.mxu0 %v790_v54 }
  0x8d   :  { %739 = vmatprep.subr.bf16.mxu0 %v952_v14 }
  0x90   :  { %740 = vmatpush3.bf16.msra.mxu0 %v791_v55 }
  0x91   :  { %741 = vmatprep.subr.bf16.mxu0 %v952_v14 }
  0x94   :  { %742 = vmatpush3.bf16.msra.mxu0 %v792_v56 }
  0x95   :  { %743 = vmatprep.subr.bf16.mxu0 %v952_v14 }
  0x98   :  { %744 = vmatpush3.bf16.msra.mxu0 %v793_v57 }
  0x99   :  { %745 = vmatprep.subr.bf16.mxu0 %v952_v14 }
  0x9c   :  { %746 = vmatpush3.bf16.msra.mxu0 %v794_v58 }
  0x9d   :  { %747 = vmatprep.subr.bf16.mxu0 %v952_v14 }
  0xa0   :  { %748 = vmatpush3.bf16.msra.mxu0 %v795_v59 }
  0xa1   :  { %749 = vmatprep.subr.bf16.mxu0 %v952_v14 }
  0xa4   :  { %750 = vmatpush3.bf16.msra.mxu0 %v796_v60 }
 0x159   :  { %v691_v21 = vpop.f32.mrb[0].mxu0 }
 0x15a   :  { %v692_v22 = vpop.f32.mrb[1].mxu0 }
 0x15b   :  { %v693_v23 = vadd.f32 %v692_v22, %v691_v21  ;;  %v694_v24 = vpop.f32.mrb[2].mxu0  ;;  %v664_v21 = vld [vmem:[%s1126_s3 + $0x2] ss:$0 sm:$0xff] }
 0x15c   :  { %v695_v25 = vpop.f32.mrb[3].mxu0 }
 0x15d   :  { %v337_v26 = vrot.slane %v693_v23, 4  ;;  %v343_v27 = vmul.f32 %v693_v23, %v693_v23 }
 0x15f   :  { %v338_v28 = vadd.f32 %v693_v23, %v337_v26  ;;  %v344_v29 = vrot.slane %v343_v27, 4 }
 0x161   :  { %v339_v30 = vrot.slane %v338_v28, 2  ;;  %v345_v31 = vadd.f32 %v344_v29, %v343_v27 }
 0x163   :  { %v340_v32 = vadd.f32 %v339_v30, %v338_v28  ;;  %v346_v33 = vrot.slane %v345_v31, 2  ;;  %v666_v28 = vld [vmem:[%s1129_s6] ss:$0 sm:$0xff] }
 0x165   :  { %v341_v34 = vrot.slane %v340_v32, 1  ;;  %v347_v35 = vadd.f32 %v346_v33, %v345_v31 }
 0x167   :  { %v342_v36 = vadd.f32 %v341_v34, %v340_v32  ;;  %v348_v37 = vrot.slane %v347_v35, 1 }
 0x169   :  { %v349_v38 = vadd.f32 %v348_v37, %v347_v35  ;;  %v350_v39 = vmul.f32 0.125, %v342_v36 }
 0x16b   :  { %v351_v40 = vmul.f32 0.125, %v349_v38  ;;  %v352_v41 = vmul.f32 %v350_v39, %v350_v39  ;;  %v354_v44 = vsub.f32 %v693_v23, %v350_v39  ;;  %v665_v23 = vld [vmem:[%s1126_s3 + $0x3] ss:$0 sm:$0xff] }
 0x16d   :  { %v353_v42 = vsub.f32 %v351_v40, %v352_v41 }
 0x16f   :  { %v355_v43 = vadd.f32 1e-05, %v353_v42 }
 0x171   :  { %801 = vrsqrt.f32 %v355_v43 }
 0x17b   :  { %v802_v45 = vpop.eup %801 }
 0x17c   :  { %v357_v47 = vmul.f32 %v802_v45, %v354_v44 }
 0x17e   :  { %v362_v49 = vmul.f32 %v654_v46, %v357_v47 }
 0x180   :  { %v367_v50 = vadd.f32 %v655_v48, %v362_v49 }
 0x182   :  { %v368_v51 = vmax.f32 %v367_v50, 0.0 }
 0x184   :  { %v369_v52 = vpack.c.bf16 %v368_v51, %v368_v51 }
 0x186   :  { %732 = vmatmul.mubr.bf16.vlgmr.msra.gmra.mrb[0].mxu1 %v369_v52 }
 0x259   :  { %v468_v61 = vpop.f32.mrb[0].mxu1 }
 0x25a   :  { %v476_v62 = vrot.slane %v468_v61, 4  ;;  %v482_v63 = vmul.f32 %v468_v61, %v468_v61  ;;  %v733_v0 = vpop.f32.mrb[1].mxu1 }
 0x25b   :  { %v471_v1 = vpop.f32.mrb[2].mxu1 }
 0x25c   :  { %v477_v2 = vadd.f32 %v476_v62, %v468_v61  ;;  %v483_v3 = vrot.slane %v482_v63, 4  ;;  %v734_v4 = vpop.f32.mrb[3].mxu1 }
 0x25e   :  { %v478_v5 = vrot.slane %v477_v2, 2  ;;  %v484_v6 = vadd.f32 %v483_v3, %v482_v63 }
 0x260   :  { %v479_v7 = vadd.f32 %v478_v5, %v477_v2  ;;  %v485_v8 = vrot.slane %v484_v6, 2 }
 0x262   :  { %v480_v9 = vrot.slane %v479_v7, 1  ;;  %v486_v10 = vadd.f32 %v485_v8, %v484_v6 }
 0x264   :  { %v481_v13 = vadd.f32 %v480_v9, %v479_v7  ;;  %v487_v11 = vrot.slane %v486_v10, 1 }
 0x266   :  { %v488_v12 = vadd.f32 %v487_v11, %v486_v10  ;;  %v489_v15 = vmul.f32 0.125, %v481_v13 }
 0x268   :  { %v490_v14 = vmul.f32 0.125, %v488_v12  ;;  %v491_v16 = vmul.f32 %v489_v15, %v489_v15  ;;  %v493_v19 = vsub.f32 %v468_v61, %v489_v15 }
 0x26a   :  { %v492_v17 = vsub.f32 %v490_v14, %v491_v16 }
 0x26c   :  { %v494_v18 = vadd.f32 1e-05, %v492_v17 }
 0x26e   :  { %803 = vrsqrt.f32 %v494_v18 }
 0x278   :  { %v804_v20 = vpop.eup %803 }
 0x279   :  { %v496_v22 = vmul.f32 %v804_v20, %v493_v19 }
 0x27b   :  { %v501_v24 = vmul.f32 %v664_v21, %v496_v22 }
 0x27d   :  { %v506_v25 = vadd.f32 %v665_v23, %v501_v24 }
 0x27f   :  { %v507_v26 = vmax.f32 %v506_v25, 0.0 }
 0x281   :  { %v508_v27 = vpack.c.bf16 %v507_v26, %v507_v26 }
 0x283   :  { %752 = vmatmul.mubr.bf16.vlgmr.msra.gmra.mrb[4].mxu0 %v508_v27 }
 0x356   :  { %v614_v29 = vpop.f32.mrb[4].mxu0 }
 0x357   :  { %v615_v30 = vadd.f32 %v666_v28, %v614_v29  ;;  %v753_v31 = vpop.f32.mrb[5].mxu0 }
 0x358   :  { %v617_v32 = vpop.f32.mrb[6].mxu0 }
 0x359   :  { %620 = vst [vmem:[#allocation11] sm:$0xff] %v615_v30  ;;  %v754_v33 = vpop.f32.mrb[7].mxu0 }
 0x35a   :  { %926 = shalt.err (!%p923_p2)
}
 0x35b   :  { %s927_s6 = scalar_lea.hbm %s1130_s7, 128 }
 0x35c   :  { %p928_p3 = scmp.ne.s32.totalorder %s1130_s7, %s927_s6  ;;  %p931_p4 = scmp.lt.u32.totalorder %s927_s6, %s1130_s7 }
 0x35e   :  { %p933_p5 = pnand %p931_p4, %p928_p3 }
 0x360   :  { %936 = shalt.err (!%p933_p5)
}
 0x361   :  { %630 = dma.vmem_to_hbm [thread:$0]  %s628_s22, 128, %s1130_s7, [#allocation4]  }
 0x362   :  { %943 = dma.done.wait [#allocation4], 128  }
 0x363   :  { %944 = vsyncadd [#allocation4], 4294967168 }
 0x364   :  { %634 = vsyncpa [#allocation3], 1 }
 0x365   :  { %635 = vsyncpa [#allocation6], 1 }
 0x366   :  { %636 = vsyncpa [#allocation9], 1 }
 0x367   :  { %637 = vsyncpa [#allocation4], 1 }

</bundles_post_ra>
